<compile_context>
chip_gen: v5e
topology: v5e:2x2
jax: 0.10.0
libtpu: 0.0.40
codegen_flags: <defaults>
</compile_context>

<pallas_src>
import functools

import jax
import jax.numpy as jnp
from jax.experimental import pallas as pl
from jax.experimental.pallas import tpu as pltpu


def _round_up(x, m):
    return (x + m - 1) // m * m


def temporal_block_kernel(*refs, k, dilation, pad, l_tile, cout, cout_p,
                          fused_ds, identity_res):
    """One (batch element, L tile) step of the fused TemporalBlock.

    Channels-first layout: the temporal axis sits on the 128-lane dimension, so every
    matmul is W(rows, K) @ X(K, l_tile) and all output stores are lane-dense.

    refs (inputs, outputs, scratch in order):
      x_ref  : (1, Cin, l_tile)      current temporal tile of the input
      wc_ref : (rows, k*Cin)         conv1 weight, taps stacked along the contraction axis;
                                     when fused_ds, rows [cout_p:] hold the 1x1 downsample
                                     weight placed in the last tap slot
      bc_ref : (rows, 1)
      w2_ref : (cout_p, k*cout_p), b2_ref : (cout_p, 1)
      [wd_ref: (cout_p, Cin), bd_ref: (cout_p, 1)]   only when the downsample is unfused
      out_ref: (1, cout, l_tile)
      xh_ref : (Cin, pad)            carried causal halo of x   (zeroed at l == 0)
      yh_ref : (cout_p, pad)         carried causal halo of y1  (zeroed at l == 0)
    """
    if fused_ds or identity_res:
        x_ref, wc_ref, bc_ref, w2_ref, b2_ref, out_ref, xh_ref, yh_ref = refs
        wd_ref = bd_ref = None
    else:
        (x_ref, wc_ref, bc_ref, w2_ref, b2_ref, wd_ref, bd_ref,
         out_ref, xh_ref, yh_ref) = refs

    cdt = wc_ref.dtype

    if pad > 0:
        # Zeroing the carried halos at the first L tile *is* the causal left pad
        # (pad + chomp) of both convolutions.
        @pl.when(pl.program_id(1) == 0)
        def _init():
            xh_ref[...] = jnp.zeros_like(xh_ref)
            yh_ref[...] = jnp.zeros_like(yh_ref)

    x_blk = x_ref[0]                                               # (Cin, l_tile)
    x_ext = (jnp.concatenate([xh_ref[...], x_blk], axis=1)         # (Cin, pad + l_tile)
             if pad > 0 else x_blk)
    xc = x_ext.astype(cdt)                                         # single cast, pre tap-stack

    # ---- conv1 (+ optionally the fused 1x1 downsample): one MXU matmul -------------
    x_taps = jnp.concatenate(
        [xc[:, t * dilation: t * dilation + l_tile] for t in range(k)], axis=0)
    z = jnp.dot(wc_ref[...], x_taps, preferred_element_type=jnp.float32) + bc_ref[...]
    y1 = jnp.maximum(z[:cout_p, :], 0.0)                           # (cout_p, l_tile) f32

    # ---- conv2 over [y1 halo | y1] --------------------------------------------------
    y1_ext = (jnp.concatenate([yh_ref[...], y1], axis=1)           # (cout_p, pad + l_tile)
              if pad > 0 else y1)
    y1c = y1_ext.astype(cdt)                                       # single cast, pre tap-stack
    y_taps = jnp.concatenate(
        [y1c[:, t * dilation: t * dilation + l_tile] for t in range(k)], axis=0)
    y2 = jnp.maximum(
        jnp.dot(w2_ref[...], y_taps, preferred_element_type=jnp.float32) + b2_ref[...],
        0.0)                                                       # (cout_p, l_tile) f32

    # ---- residual --------------------------------------------------------------------
    if identity_res:
        out = y2[:cout, :] + x_blk.astype(jnp.float32)
    elif fused_ds:
        out = (y2 + z[cout_p:, :])[:cout, :]
    else:
        x_cur = xc[:, pad:] if pad > 0 else xc                     # x at this tile's positions
        res = jnp.dot(wd_ref[...], x_cur,
                      preferred_element_type=jnp.float32) + bd_ref[...]
        out = (y2 + res)[:cout, :]

    out_ref[0] = out.astype(out_ref.dtype)

    # carry the last `pad` temporal columns into the next L tile of this batch element
    if pad > 0:
        xh_ref[...] = x_ext[:, l_tile:]
        yh_ref[...] = y1_ext[:, l_tile:]


def _estimate_vmem_bytes(*, cin, cout_p, wc_rows, k, l_tile, pad,
                         x_bytes, c_bytes, o_bytes):
    """Rough per-step VMEM budget: double-buffered I/O + weights + value intermediates."""
    lt_ext = l_tile + pad
    n = 0
    n += 2 * cin * l_tile * x_bytes                                    # x block (x2 buffers)
    n += 2 * cout_p * l_tile * o_bytes                                 # out block (x2 buffers)
    n += 2 * (wc_rows * (k * cin + 1) + cout_p * (k * cout_p + 1)) * c_bytes  # weights/biases
    n += k * (cin + cout_p) * l_tile * c_bytes                         # tap stacks
    n += cin * lt_ext * (x_bytes + c_bytes)                            # x_ext + cast
    n += cout_p * lt_ext * (4 + c_bytes)                               # y1_ext + cast
    n += (wc_rows + cout_p) * l_tile * 4                               # z, y2 (f32)
    n += (cin * x_bytes + cout_p * 4) * max(pad, 1)                    # carried halos
    return n


def temporal_block_forward(x_ncl, w1_oik, b1, w2_oik, b2, wd_oi=None, bd=None, *,
                           kernel_size, dilation, l_tile=None,
                           compute_dtype=jnp.float32, fuse_downsample=None,
                           vmem_limit_bytes=None):
    """x_ncl: (N, Cin, L) in PyTorch NCL layout (kept channels-first end-to-end).

    w1_oik: (Cout, Cin, k), w2_oik: (Cout, Cout, k) -- already weight-normed effective weights.
    wd_oi : (Cout, Cin) 1x1 downsample weight, or None for identity residual (Cin == Cout).
    compute_dtype: dtype of the matmul operands (f32 accumulation either way); pass
                   jnp.bfloat16 for the native bf16 MXU path / halved operand DMA bytes
                   (slightly different numerics from the f32 PyTorch reference).
    """
    N, Cin, L = x_ncl.shape
    Cout, Cin_w, k = w1_oik.shape
    assert Cin_w == Cin and k == kernel_size
    pad = (k - 1) * dilation                      # causal pad == chomp size (stride 1)
    has_downsample = wd_oi is not None
    identity_res = not has_downsample
    if identity_res:
        assert Cin == Cout, "identity residual requires n_inputs == n_outputs"

    # sublane-align output channels so the fused z[:cout_p]/z[cout_p:] split and all
    # weight rows land on (8,128) tile boundaries.
    cout_p = _round_up(Cout, 8)
    cpad = cout_p - Cout

    # Only fuse the 1x1 downsample into the conv1 matmul while the stacked weight height
    # fits the MXU (256 on v6e/v7x); above that the zero columns cost real MXU passes.
    if fuse_downsample is None:
        fuse_downsample = has_downsample and (2 * cout_p) <= 256
    fused_ds = has_downsample and fuse_downsample

    c_dt = jnp.dtype(compute_dtype)

    # ---- host-side weight repack (done once) ---------------------------------------
    # tap-stacked matmul form: W[o, t*Cin + i] = W_conv[o, i, t]
    w1p = jnp.pad(w1_oik, ((0, cpad), (0, 0), (0, 0)))
    w1_f = jnp.transpose(w1p, (0, 2, 1)).reshape(cout_p, k * Cin)
    w2p = jnp.pad(w2_oik, ((0, cpad), (0, cpad), (0, 0)))
    w2_f = jnp.transpose(w2p, (0, 2, 1)).reshape(cout_p, k * cout_p).astype(c_dt)
    b1p = jnp.pad(b1, (0, cpad))
    b2c = jnp.pad(b2, (0, cpad))[:, None].astype(jnp.float32)

    extra_inputs, extra_specs = [], []
    if fused_ds:
        wd_p = jnp.pad(wd_oi, ((0, cpad), (0, 0)))
        # the 1x1 downsample reads x at the current position == the last tap slot
        wd_row = jnp.concatenate(
            [jnp.zeros((cout_p, (k - 1) * Cin), wd_p.dtype), wd_p], axis=1)
        wc = jnp.concatenate([w1_f, wd_row], axis=0).astype(c_dt)       # (2*cout_p, k*Cin)
        bc = jnp.concatenate([b1p, jnp.pad(bd, (0, cpad))])[:, None].astype(jnp.float32)
    else:
        wc = w1_f.astype(c_dt)
        bc = b1p[:, None].astype(jnp.float32)
        if has_downsample:
            extra_inputs = [jnp.pad(wd_oi, ((0, cpad), (0, 0))).astype(c_dt),
                            jnp.pad(bd, (0, cpad))[:, None].astype(jnp.float32)]
            extra_specs = [pl.BlockSpec((cout_p, Cin), lambda n, l: (0, 0)),
                           pl.BlockSpec((cout_p, 1), lambda n, l: (0, 0))]
    wc_rows = wc.shape[0]

    # cast x once on the host when running the bf16 operand path (halves x DMA bytes)
    x_in = x_ncl if x_ncl.dtype == c_dt else x_ncl.astype(c_dt)
    x_bytes = x_in.dtype.itemsize
    c_bytes = c_dt.itemsize
    o_bytes = jnp.dtype(x_ncl.dtype).itemsize

    # ---- L tile (lane) size: multiple of 128, shrunk to a v7x-safe VMEM budget ------
    if l_tile is None:
        l_tile = min(512, _round_up(L, 128))
        while l_tile > 128 and 1.5 * _estimate_vmem_bytes(
                cin=Cin, cout_p=cout_p, wc_rows=wc_rows, k=k, l_tile=l_tile, pad=pad,
                x_bytes=x_bytes, c_bytes=c_bytes, o_bytes=o_bytes) > (48 << 20):
            l_tile = max(128, l_tile - 128)
    Lp = _round_up(L, l_tile)
    n_l = Lp // l_tile

    if vmem_limit_bytes is None:
        est = _estimate_vmem_bytes(cin=Cin, cout_p=cout_p, wc_rows=wc_rows, k=k,
                                   l_tile=l_tile, pad=pad,
                                   x_bytes=x_bytes, c_bytes=c_bytes, o_bytes=o_bytes)
        # keep inside v7x's 64 MiB physical VMEM (<= ~48 MiB), never below the scoped default
        vmem_limit_bytes = int(min(48 << 20, max(32 << 20, int(1.5 * est))))

    # right-pad L to a tile multiple; the convs are causal so the padded tail never
    # influences the first L output positions, which are all we return.
    x_p = x_in if Lp == L else jnp.pad(x_in, ((0, 0), (0, 0), (0, Lp - L)))

    kern = functools.partial(
        temporal_block_kernel, k=k, dilation=dilation, pad=pad, l_tile=l_tile,
        cout=Cout, cout_p=cout_p, fused_ds=fused_ds, identity_res=identity_res)

    halo_w = max(pad, 1)
    out = pl.pallas_call(
        kern,
        out_shape=jax.ShapeDtypeStruct((N, Cout, Lp), x_ncl.dtype),
        grid_spec=pltpu.PrefetchScalarGridSpec(
            num_scalar_prefetch=0,
            grid=(N, n_l),
            in_specs=[
                pl.BlockSpec((1, Cin, l_tile), lambda n, l: (n, 0, l)),
                pl.BlockSpec((wc_rows, k * Cin), lambda n, l: (0, 0)),
                pl.BlockSpec((wc_rows, 1), lambda n, l: (0, 0)),
                pl.BlockSpec((cout_p, k * cout_p), lambda n, l: (0, 0)),
                pl.BlockSpec((cout_p, 1), lambda n, l: (0, 0)),
            ] + extra_specs,
            out_specs=pl.BlockSpec((1, Cout, l_tile), lambda n, l: (n, 0, l)),
            scratch_shapes=[
                pltpu.VMEM((Cin, halo_w), x_p.dtype),        # carried x causal halo
                pltpu.VMEM((cout_p, halo_w), jnp.float32),   # carried y1 causal halo
            ]),
        # batch axis is independent (megacore-shardable on v7x); the L axis carries the
        # causal halo in scratch so it must run sequentially.
        compiler_params=pltpu.CompilerParams(
            dimension_semantics=("parallel", "arbitrary"),
            vmem_limit_bytes=vmem_limit_bytes),
        # TODO(synk): weights/biases use constant index maps; if Mosaic does not collapse
        #             their second pipeline buffer, single-buffer them via pipeline_mode.
    )(x_p, wc, bc, w2_f, b2c, *extra_inputs)

    return out if Lp == L else out[:, :, :L]


# ------------------------- pure-JAX reference (for sanity) -------------------------
def _ref_forward(x_ncl, w1_oik, b1, w2_oik, b2, wd_oi, bd, *, dilation, pad):
    def conv1d(x, w, b, dil, p):
        y = jax.lax.conv_general_dilated(
            x, w, window_strides=(1,), padding=[(p, p)], rhs_dilation=(dil,),
            dimension_numbers=('NCH', 'OIH', 'NCH'))
        return y + b[None, :, None]

    y = conv1d(x_ncl, w1_oik, b1, dilation, pad)
    y = jnp.maximum(y[:, :, :y.shape[2] - pad] if pad else y, 0.0)   # chomp + relu
    y = conv1d(y, w2_oik, b2, dilation, pad)
    y = jnp.maximum(y[:, :, :y.shape[2] - pad] if pad else y, 0.0)
    if wd_oi is None:
        res = x_ncl
    else:
        res = conv1d(x_ncl, wd_oi[:, :, None], bd, 1, 0)             # 1x1 downsample
    return y + res


def _weight_norm(v, g):
    # torch weight_norm default dim=0: W = g * v / ||v||_2, norm over (in, k) per out-channel.
    norm = jnp.sqrt(jnp.sum(v * v, axis=(1, 2), keepdims=True))
    return g[:, None, None] * v / norm


if __name__ == "__main__":
    key = jax.random.PRNGKey(0)
    keys = jax.random.split(key, 10)

    # ---- test 1: Cin != Cout -> fused 1x1 downsample, 2 L tiles (halo carry) --------
    N, Cin, Cout, L = 2, 4, 8, 256
    kernel_size, dilation = 3, 2
    pad = (kernel_size - 1) * dilation                               # == 4

    v1 = 0.01 * jax.random.normal(keys[0], (Cout, Cin, kernel_size), jnp.float32)
    g1 = 0.01 * (1.0 + jax.random.uniform(keys[1], (Cout,), jnp.float32))
    v2 = 0.01 * jax.random.normal(keys[2], (Cout, Cout, kernel_size), jnp.float32)
    g2 = 0.01 * (1.0 + jax.random.uniform(keys[3], (Cout,), jnp.float32))
    w1 = _weight_norm(v1, g1)                                        # effective weights
    w2 = _weight_norm(v2, g2)
    b1 = 0.05 * jax.random.normal(keys[4], (Cout,), jnp.float32)
    b2 = 0.05 * jax.random.normal(keys[5], (Cout,), jnp.float32)
    wd = 0.01 * jax.random.normal(keys[6], (Cout, Cin), jnp.float32)
    bd = 0.05 * jax.random.normal(keys[7], (Cout,), jnp.float32)
    x = jax.random.normal(keys[8], (N, Cin, L), jnp.float32)         # PyTorch NCL input

    ref = _ref_forward(x, w1, b1, w2, b2, wd, bd, dilation=dilation, pad=pad)

    out = temporal_block_forward(x, w1, b1, w2, b2, wd, bd,
                                 kernel_size=kernel_size, dilation=dilation, l_tile=128)
    out = jax.block_until_ready(out)
    assert out.shape == (N, Cout, L)
    assert jnp.allclose(out, ref, atol=1e-4, rtol=1e-4), "fused downsample case mismatch"

    # ---- test 2: Cin == Cout -> identity residual, L not a tile multiple -------------
    Cin2 = Cout2 = 8
    k2, dil2 = 3, 1
    pad2 = (k2 - 1) * dil2
    L2 = 200                                                          # pads to 256 internally
    keys2 = jax.random.split(keys[9], 8)
    v1b = 0.01 * jax.random.normal(keys2[0], (Cout2, Cin2, k2), jnp.float32)
    g1b = 0.01 * (1.0 + jax.random.uniform(keys2[1], (Cout2,), jnp.float32))
    v2b = 0.01 * jax.random.normal(keys2[2], (Cout2, Cout2, k2), jnp.float32)
    g2b = 0.01 * (1.0 + jax.random.uniform(keys2[3], (Cout2,), jnp.float32))
    w1b, w2b = _weight_norm(v1b, g1b), _weight_norm(v2b, g2b)
    b1b = 0.05 * jax.random.normal(keys2[4], (Cout2,), jnp.float32)
    b2b = 0.05 * jax.random.normal(keys2[5], (Cout2,), jnp.float32)
    xb = jax.random.normal(keys2[6], (N, Cin2, L2), jnp.float32)

    ref2 = _ref_forward(xb, w1b, b1b, w2b, b2b, None, None, dilation=dil2, pad=pad2)
    out2 = temporal_block_forward(xb, w1b, b1b, w2b, b2b, None, None,
                                  kernel_size=k2, dilation=dil2, l_tile=128)
    out2 = jax.block_until_ready(out2)
    assert out2.shape == (N, Cout2, L2)
    assert jnp.allclose(out2, ref2, atol=1e-4, rtol=1e-4), "identity case mismatch"

    # ---- test 3: unfused downsample path (MXU-height gate exercised manually) --------
    out3 = temporal_block_forward(x, w1, b1, w2, b2, wd, bd,
                                  kernel_size=kernel_size, dilation=dilation,
                                  fuse_downsample=False)             # auto l_tile
    out3 = jax.block_until_ready(out3)
    assert jnp.allclose(out3, ref, atol=1e-4, rtol=1e-4), "unfused downsample mismatch"

    print("KERNEL_OK")
</pallas_src>

<mosaic_0001>
module attributes {stable_mosaic.version = 11 : i64} {
  func.func @temporal_block_kernel(%arg0: i32, %arg1: i32, %arg2: memref<1x4x128xf32, #tpu.memory_space<vmem>>, %arg3: memref<16x12xf32, #tpu.memory_space<vmem>>, %arg4: memref<16x1xf32, #tpu.memory_space<vmem>>, %arg5: memref<8x24xf32, #tpu.memory_space<vmem>>, %arg6: memref<8x1xf32, #tpu.memory_space<vmem>>, %arg7: memref<1x8x128xf32, #tpu.memory_space<vmem>>, %arg8: memref<4x4xf32, #tpu.memory_space<vmem>>, %arg9: memref<8x4xf32, #tpu.memory_space<vmem>>) attributes {dimension_semantics = [#tpu.dimension_semantics<parallel>, #tpu.dimension_semantics<arbitrary>], iteration_bounds = array<i64: 2, 2>, scalar_prefetch = 0 : i64, scratch_operands = 2 : i64, tpu.core_type = #tpu.core_type<tc>, window_params = [{transform_indices = @transform_0, window_bounds = array<i64: 1, 4, 128>}, {pipeline_mode = #tpu.pipeline_mode<synchronous>, transform_indices = @transform_1, window_bounds = array<i64: 16, 12>}, {pipeline_mode = #tpu.pipeline_mode<synchronous>, transform_indices = @transform_2, window_bounds = array<i64: 16, 1>}, {pipeline_mode = #tpu.pipeline_mode<synchronous>, transform_indices = @transform_3, window_bounds = array<i64: 8, 24>}, {pipeline_mode = #tpu.pipeline_mode<synchronous>, transform_indices = @transform_4, window_bounds = array<i64: 8, 1>}, {transform_indices = @transform_5, window_bounds = array<i64: 1, 8, 128>}]} {
    %c0_i32 = arith.constant 0 : i32
    %0 = arith.cmpi eq, %arg1, %c0_i32 : i32
    %1 = arith.extui %0 : i1 to i32
    %c0_i32_0 = arith.constant 0 : i32
    %2 = arith.cmpi ne, %1, %c0_i32_0 : i32
    scf.if %2 {
      %cst_25 = arith.constant 0.000000e+00 : f32
      %41 = vector.broadcast %cst_25 : f32 to vector<4x4xf32>
      %c0_26 = arith.constant 0 : index
      %c0_27 = arith.constant 0 : index
      %42 = vector.load %arg8[%c0_26, %c0_27] : memref<4x4xf32, #tpu.memory_space<vmem>>, vector<4x4xf32>
      tpu.vector_store %arg8[%c0_26, %c0_27], %41 {strides = array<i32>} : memref<4x4xf32, #tpu.memory_space<vmem>>, vector<4x4xf32>,
      %cst_28 = arith.constant 0.000000e+00 : f32
      %43 = vector.broadcast %cst_28 : f32 to vector<8x4xf32>
      %c0_29 = arith.constant 0 : index
      %c0_30 = arith.constant 0 : index
      %44 = vector.load %arg9[%c0_29, %c0_30] : memref<8x4xf32, #tpu.memory_space<vmem>>, vector<8x4xf32>
      tpu.vector_store %arg9[%c0_29, %c0_30], %43 {strides = array<i32>} : memref<8x4xf32, #tpu.memory_space<vmem>>, vector<8x4xf32>,
    } else {
    }
    %c0 = arith.constant 0 : index
    %c0_1 = arith.constant 0 : index
    %c0_2 = arith.constant 0 : index
    %3 = vector.load %arg2[%c0, %c0_1, %c0_2] : memref<1x4x128xf32, #tpu.memory_space<vmem>>, vector<1x4x128xf32>
    %4 = vector.shape_cast %3 : vector<1x4x128xf32> to vector<4x128xf32>
    %c0_3 = arith.constant 0 : index
    %c0_4 = arith.constant 0 : index
    %5 = vector.load %arg8[%c0_3, %c0_4] : memref<4x4xf32, #tpu.memory_space<vmem>>, vector<4x4xf32>
    %6 = tpu.concatenate %5, %4 in 1 : vector<4x4xf32>, vector<4x128xf32> -> vector<4x132xf32>
    %7 = vector.extract_strided_slice %6 {offsets = [0, 0], sizes = [4, 128], strides = [1, 1]} : vector<4x132xf32> to vector<4x128xf32>
    %8 = vector.extract_strided_slice %6 {offsets = [0, 2], sizes = [4, 128], strides = [1, 1]} : vector<4x132xf32> to vector<4x128xf32>
    %9 = vector.extract_strided_slice %6 {offsets = [0, 4], sizes = [4, 128], strides = [1, 1]} : vector<4x132xf32> to vector<4x128xf32>
    %10 = tpu.concatenate %7, %8, %9 in 0 : vector<4x128xf32>, vector<4x128xf32>, vector<4x128xf32> -> vector<12x128xf32>
    %c0_5 = arith.constant 0 : index
    %c0_6 = arith.constant 0 : index
    %11 = vector.load %arg3[%c0_5, %c0_6] : memref<16x12xf32, #tpu.memory_space<vmem>>, vector<16x12xf32>
    %cst = arith.constant dense<0.000000e+00> : vector<16x128xf32>
    %12 = tpu.matmul %11, %10, %cst {dimension_numbers = #tpu.dot_dimension_numbers<[1], [0], [0], [1], [0, 0, 1, 1], [], []>} : vector<16x12xf32>, vector<12x128xf32>, vector<16x128xf32> -> vector<16x128xf32>
    %c0_7 = arith.constant 0 : index
    %c0_8 = arith.constant 0 : index
    %13 = vector.load %arg4[%c0_7, %c0_8] : memref<16x1xf32, #tpu.memory_space<vmem>>, vector<16x1xf32>
    %14 = vector.broadcast %13 : vector<16x1xf32> to vector<16x128xf32>
    %15 = arith.addf %12, %14 : vector<16x128xf32>
    %16 = vector.extract_strided_slice %15 {offsets = [0, 0], sizes = [8, 128], strides = [1, 1]} : vector<16x128xf32> to vector<8x128xf32>
    %cst_9 = arith.constant 0.000000e+00 : f32
    %17 = vector.broadcast %cst_9 : f32 to vector<8x128xf32>
    %18 = arith.maximumf %16, %17 : vector<8x128xf32>
    %c0_10 = arith.constant 0 : index
    %c0_11 = arith.constant 0 : index
    %19 = vector.load %arg9[%c0_10, %c0_11] : memref<8x4xf32, #tpu.memory_space<vmem>>, vector<8x4xf32>
    %20 = tpu.concatenate %19, %18 in 1 : vector<8x4xf32>, vector<8x128xf32> -> vector<8x132xf32>
    %21 = vector.extract_strided_slice %20 {offsets = [0, 0], sizes = [8, 128], strides = [1, 1]} : vector<8x132xf32> to vector<8x128xf32>
    %22 = vector.extract_strided_slice %20 {offsets = [0, 2], sizes = [8, 128], strides = [1, 1]} : vector<8x132xf32> to vector<8x128xf32>
    %23 = vector.extract_strided_slice %20 {offsets = [0, 4], sizes = [8, 128], strides = [1, 1]} : vector<8x132xf32> to vector<8x128xf32>
    %24 = tpu.concatenate %21, %22, %23 in 0 : vector<8x128xf32>, vector<8x128xf32>, vector<8x128xf32> -> vector<24x128xf32>
    %c0_12 = arith.constant 0 : index
    %c0_13 = arith.constant 0 : index
    %25 = vector.load %arg5[%c0_12, %c0_13] : memref<8x24xf32, #tpu.memory_space<vmem>>, vector<8x24xf32>
    %cst_14 = arith.constant dense<0.000000e+00> : vector<8x128xf32>
    %26 = tpu.matmul %25, %24, %cst_14 {dimension_numbers = #tpu.dot_dimension_numbers<[1], [0], [0], [1], [0, 0, 1, 1], [], []>} : vector<8x24xf32>, vector<24x128xf32>, vector<8x128xf32> -> vector<8x128xf32>
    %c0_15 = arith.constant 0 : index
    %c0_16 = arith.constant 0 : index
    %27 = vector.load %arg6[%c0_15, %c0_16] : memref<8x1xf32, #tpu.memory_space<vmem>>, vector<8x1xf32>
    %28 = vector.broadcast %27 : vector<8x1xf32> to vector<8x128xf32>
    %29 = arith.addf %26, %28 : vector<8x128xf32>
    %cst_17 = arith.constant 0.000000e+00 : f32
    %30 = vector.broadcast %cst_17 : f32 to vector<8x128xf32>
    %31 = arith.maximumf %29, %30 : vector<8x128xf32>
    %32 = vector.extract_strided_slice %15 {offsets = [8, 0], sizes = [8, 128], strides = [1, 1]} : vector<16x128xf32> to vector<8x128xf32>
    %33 = arith.addf %31, %32 : vector<8x128xf32>
    %c0_18 = arith.constant 0 : index
    %c0_19 = arith.constant 0 : index
    %c0_20 = arith.constant 0 : index
    %34 = vector.load %arg7[%c0_18, %c0_19, %c0_20] : memref<1x8x128xf32, #tpu.memory_space<vmem>>, vector<1x8x128xf32>
    %35 = vector.shape_cast %34 : vector<1x8x128xf32> to vector<8x128xf32>
    %36 = vector.shape_cast %33 : vector<8x128xf32> to vector<1x8x128xf32>
    tpu.vector_store %arg7[%c0_18, %c0_19, %c0_20], %36 {strides = array<i32>} : memref<1x8x128xf32, #tpu.memory_space<vmem>>, vector<1x8x128xf32>,
    %37 = vector.extract_strided_slice %6 {offsets = [0, 128], sizes = [4, 4], strides = [1, 1]} : vector<4x132xf32> to vector<4x4xf32>
    %c0_21 = arith.constant 0 : index
    %c0_22 = arith.constant 0 : index
    %38 = vector.load %arg8[%c0_21, %c0_22] : memref<4x4xf32, #tpu.memory_space<vmem>>, vector<4x4xf32>
    tpu.vector_store %arg8[%c0_21, %c0_22], %37 {strides = array<i32>} : memref<4x4xf32, #tpu.memory_space<vmem>>, vector<4x4xf32>,
    %39 = vector.extract_strided_slice %20 {offsets = [0, 128], sizes = [8, 4], strides = [1, 1]} : vector<8x132xf32> to vector<8x4xf32>
    %c0_23 = arith.constant 0 : index
    %c0_24 = arith.constant 0 : index
    %40 = vector.load %arg9[%c0_23, %c0_24] : memref<8x4xf32, #tpu.memory_space<vmem>>, vector<8x4xf32>
    tpu.vector_store %arg9[%c0_23, %c0_24], %39 {strides = array<i32>} : memref<8x4xf32, #tpu.memory_space<vmem>>, vector<8x4xf32>,
    return
  }
  func.func @transform_0(%arg0: i32, %arg1: i32) -> (i32, i32, i32) {
    %c0_i32 = arith.constant 0 : i32
    %c0_i32_0 = arith.constant 0 : i32
    return %arg0, %c0_i32, %arg1 : i32, i32, i32
  }
  func.func @transform_1(%arg0: i32, %arg1: i32) -> (i32, i32) {
    %c0_i32 = arith.constant 0 : i32
    %c0_i32_0 = arith.constant 0 : i32
    %c0_i32_1 = arith.constant 0 : i32
    return %c0_i32, %c0_i32_0 : i32, i32
  }
  func.func @transform_2(%arg0: i32, %arg1: i32) -> (i32, i32) {
    %c0_i32 = arith.constant 0 : i32
    %c0_i32_0 = arith.constant 0 : i32
    %c0_i32_1 = arith.constant 0 : i32
    return %c0_i32, %c0_i32_0 : i32, i32
  }
  func.func @transform_3(%arg0: i32, %arg1: i32) -> (i32, i32) {
    %c0_i32 = arith.constant 0 : i32
    %c0_i32_0 = arith.constant 0 : i32
    %c0_i32_1 = arith.constant 0 : i32
    return %c0_i32, %c0_i32_0 : i32, i32
  }
  func.func @transform_4(%arg0: i32, %arg1: i32) -> (i32, i32) {
    %c0_i32 = arith.constant 0 : i32
    %c0_i32_0 = arith.constant 0 : i32
    %c0_i32_1 = arith.constant 0 : i32
    return %c0_i32, %c0_i32_0 : i32, i32
  }
  func.func @transform_5(%arg0: i32, %arg1: i32) -> (i32, i32, i32) {
    %c0_i32 = arith.constant 0 : i32
    %c0_i32_0 = arith.constant 0 : i32
    return %arg0, %c0_i32, %arg1 : i32, i32, i32
  }
}

</mosaic_0001>

<bundles_post_ra>
// kernel: tpu_custom_call.1
= control target key start
LH: loop header
LB: loop body
LE: loop exit
PB: predicated region body
PF: predicated region fallthrough
CT: control target
= control target key end

     0   :  { %10 = vsyncpa [#allocation5], 0  ;;  %s989_s0 = inlined_call_operand.vmem [shape: f32[2,4,256], index: 0, kind: input, shape index: {}]   ;;  %s990_s1 = inlined_call_operand.hbm [shape: f32[16,12], index: 1, kind: input, shape index: {}]   ;;  %s991_s2 = inlined_call_operand.vmem [shape: f32[16,1], index: 2, kind: input, shape index: {}]   ;;  %s992_s3 = inlined_call_operand.vmem [shape: f32[8,24], index: 3, kind: input, shape index: {}]   ;;  %s993_s4 = inlined_call_operand.vmem [shape: f32[8,1], index: 4, kind: input, shape index: {}]   ;;  %s994_s5 = inlined_call_operand.hbm [shape: f32[2,8,256], index: 5, kind: output, shape index: {}]  }
   0x1   :  { %11 = vsyncpa [#allocation6], 0 }
   0x2   :  { %13 = vsyncpa [#allocation6 + $0x1], 0  ;;  %s806_s18 = smov 0   ;;  %s808_s19 = smov 0  }
   0x3   :  { %s810_s20 = smov 0   ;;  %s812_s21 = smov 0  }
   0x4   :  { %s814_s22 = smov 0   ;;  %s816_s23 = smov 0  }
   0x5   :  { %s818_s24 = smov 0   ;;  %s820_s25 = smov 0  }
   0x6 LB: > { %s510_s26 = sadd.s32 4294967295, %s766_s25   ;;  %s511_s27 = sadd.s32 4294967294, %s766_s25   ;;  %s766_s25 = sphi %s820_s25, %s19_s25   ;;  %s762_s24 = sphi %s818_s24, %s1005_s24   ;;  %s758_s23 = sphi %s816_s23, %s1004_s23   ;;  %s754_s22 = sphi %s814_s22, %s1003_s22   ;;  %s750_s21 = sphi %s812_s21, %s1002_s21   ;;  %s746_s20 = sphi %s810_s20, %s1001_s20   ;;  %s742_s19 = sphi %s808_s19, %s1000_s19   ;;  %s738_s18 = sphi %s806_s18, %s999_s18  }
   0x7   : > { %s28_s28 = sadd.s32 1, %s758_s23  ;;  %s31_s29 = sadd.s32 1, %s762_s24 }
   0x8   : > { %p29_p0 = scmp.ge.s32.totalorder %s28_s28, 2  ;;  %s152_s30 = sadd.s32 1, %s746_s20 }
   0x9   : > { %p162_p1 = scmp.ne.s32.totalorder %s746_s20, %s742_s19  ;;  %p163_p2 = scmp.eq.s32.totalorder %s510_s26, 3 }
   0xa   : > { %s1007_s28 = smov (%p29_p0, %s28_s28), 0  ;;  %s1009_s29 = smov (!%p29_p0, %s31_s29), %s762_s24 }
   0xb   : > { %s148_s6 = ssub.s32 %s758_s23, %s1007_s28  ;;  %p858_p3 = por %p163_p2, %p162_p1 }
   0xc   : > { %p33_p4 = scmp.ge.s32.totalorder %s1009_s29, 2  ;;  %p168_p5 = scmp.ne.s32.totalorder %s742_s19, %s738_s18 }
   0xd   : > { %p169_p6 = scmp.eq.s32.totalorder %s511_s27, 3  ;;  %p512_p7 = scmp.ge.s32.totalorder %s766_s25, 1 }
   0xe   : > { %s1011_s29 = smov (%p33_p4, %s1009_s29), 0  ;;  %p176_p9 = scmp.lt.s32.totalorder %s766_s25, 5 }
   0xf   : > { %p867_p8 = por %p169_p6, %p168_p5  ;;  %s147_s9 = ssub.s32 %s762_s24, %s1011_s29 }
  0x10   : > { %s149_s10 = sor.u32 %s148_s6, %s147_s9  ;;  %p874_p10 = pnand %p512_p7, %p176_p9 }
  0x11   : > { %p150_p11 = scmp.eq.s32.totalorder %s149_s10, 0  ;;  %p878_p12 = scmp.eq.s32.totalorder %s510_s26, 0 }
  0x12   : > { %p538_p13 = pneg %p874_p10  ;;  %s187_s15 = sshll.u32 %s990_s1, 4  ;;  %s188_s15 = int_to_ptr.hbm [resolvable:$true] %s187_s15 }
  0x13   : > { %s888_s16 = scalar_select %p150_p11, %s746_s20, %s152_s30  }
  0x14   : > { %s768_s17 = smov [#allocation4]   ;;  %p539_p0 = pnand %p878_p12, %p538_p13 }
  0x15   : > { %s189_s27 = sshll.u32 %s768_s17, 4  ;;  %s769_s6 = smov 128   ;;  %s190_s27 = int_to_ptr.vmem [resolvable:$true] %s189_s27 }
  0x16   : > { %s770_s26 = smov 8   ;;  %225 = sbr.rel (%p874_p10) target bundleno = 769 (0x301), region = 40 }
  0x17   : > { %541 = dma.hbm_to_vmem [thread:$0]  (!%p539_p0), %s188_s15, 256, %s190_s27, [#allocation5], %s769_s6, %s769_s6, %s770_s26  }
  0x1b   : > { %729 = dma.done.wait (%p878_p12), [#allocation5], 256  }
  0x1c   : > { %731 = vsyncadd (%p878_p12), [#allocation5], 4294967040  ;;  %s254_s30 = sand.u32 1, %s742_s19   ;;  %p257_p1 = scmp.lt.s32.totalorder %s754_s22, 1 }
  0x1d   : > { %s902_s9 = sshll.u32 %s254_s30, 3  ;;  %p259_p2 = scmp.lt.s32.totalorder %s750_s21, 1 }
  0x1e   : > { %s258_s10 = scalar_select %p257_p1, %s754_s22, 1 }
  0x1f   : > { %s260_s11 = scalar_select %p259_p2, %s750_s21, 1 }
  0x20   : > { %s518_s13 = sshll.u32 %s258_s10, 1  ;;  %s256_s6 = scalar_lea.vmem [#allocation7], %s902_s9 }
  0x21   : > { %s262_s14 = sadd.s32 %s518_s13, %s260_s11  ;;  %p520_p4 = scmp.ne.s32.totalorder %s750_s21, 0 }
  0x22   : > { %s519_s15 = sshll.u32 %s262_s14, 2 }
  0x23   : > { %s264_s27 = scalar_lea.vmem %s989_s0, %s519_s15  ;;  %268 = sbr.rel (%p520_p4) target bundleno = 43 (0x2b), region = 48 }
  0x28   : > { %vm269_vm0 = vcmask 27648   ;;  %vm271_vm1 = vcmask 31744   ;;  %v771_v0 = vmov 0.0  }
  0x29   : > { %270 = vst.msk [vmem:[#allocation2] sm:$0xf] %vm269_vm0, %v771_v0 }
  0x2a   : > { %272 = vst.msk [vmem:[#allocation3] sm:$0xff] %vm271_vm1, %v771_v0 }
  0x2b PF: > { %v273_v1 = vld [vmem:[%s264_s27] sm:$0xf]  ;;  %s772_s26 = smov 4   ;;  %vm279_vm2 = vcmask 31744   ;;  %vm399_vm3 = vcmask 27648   ;;  %s773_s10 = smov 124  }
  0x2c   : > { %276 = vrot.lane.b32.xlu0 %v273_v1, %s772_s26  ;;  %s774_s11 = smov 126   ;;  %v301_v8 = vld [vmem:[%s991_s2] sm:$0xff]  ;;  %v775_v9 = vmov 0   ;;  %vm295_vm4 = vcmask 1014784   ;;  %vm297_vm5 = vcmask 1043456   ;;  %vm288_vm6 = vcmask 1031168  }
  0x2d   : > { %626 = vset.pattern.permute.xlu2 %v775_v9  ;;  %637 = vset.pattern.permute.xlu0 %v775_v9  ;;  %v299_v17 = vld [vmem:[#allocation4] sm:$0xff]  ;;  %vm313_vm7 = vcmask 97280   ;;  %v366_v23 = vld [vmem:[%s993_s4] sm:$0xff]  ;;  %v300_v28 = vld [vmem:[#allocation4 + $0x8] sm:$0xff]  ;;  %vm372_vm8 = vcmask 195584   ;;  %s417_s27 = sshll.u32 %s256_s6, 4  ;;  %s418_s27 = int_to_ptr.vmem [resolvable:$true] %s417_s27 }
  0x2e   : > { %305 = vperm.xlu2 %626, %v301_v8   ;;  %v302_v29 = vld [vmem:[%s991_s2 + $0x8] sm:$0xff]  ;;  %v365_v38 = vld [vmem:[%s992_s3] sm:$0xff] }
  0x30   : > { %v274_v2 = vld [vmem:[#allocation2] sm:$0xf] }
  0x31   : > { %v346_v24 = vld [vmem:[#allocation3] sm:$0xff] }
  0x88   : > { %v306_v19 = vpop.permute.xlu2 %305 }
  0x9e   : > { %v277_v3 = vpop.permute.xlu0 %276 }
  0x9f   : > { %293 = vrot.lane.b32.xlu1 %v277_v3, %s773_s10  ;;  %v280_v4 = vsel %vm279_vm2, %v274_v2, %v277_v3  ;;  %400 = vst.msk [vmem:[#allocation2] sm:$0xf] %vm399_vm3, %v277_v3  ;;  %v283_v5 = vrot.slane %v277_v3, 4 }
  0xa0   : > { %291 = vrot.lane.b32.xlu0 %v280_v4, %s773_s10  ;;  %v282_v6 = vrot.slane %v280_v4, 4 }
  0xa2   : > { %v621_v7 = vpack.i.bf16 %v283_v5, %v282_v6 }
  0xa7   : > { %622 = vrot.lane.b32.xlu1 %v621_v7, %s774_s11 }
 0x111   : > { %v294_v10 = vpop.permute.xlu1 %293 }
 0x112   : > { %v292_v11 = vpop.permute.xlu0 %291 }
 0x113   : > { %v296_v12 = vsel %vm295_vm4, %v292_v11, %v294_v10 }
 0x114   : > { %521 = vmatpush.msk.msra.mxu0 %vm297_vm5, %v296_v12  ;;  %530 = vmatpush.msk.msra.mxu2 %vm297_vm5, %v296_v12 }
 0x119   : > { %v623_v13 = vpop.permute.xlu1 %622 }
 0x11a   : > { %v625_v14 = vunpack.i.h.bf16 %v623_v13  ;;  %v624_v15 = vunpack.i.l.bf16 %v623_v13 }
 0x11c   : > { %v289_v16 = vsel %vm288_vm6, %v624_v15, %v625_v14 }
 0x11d   : > { %v298_v18 = vsel %vm297_vm5, %v280_v4, %v289_v16 }
 0x11e   : > { %337 = vmatpush.msra.mxu0 %v298_v18  ;;  %531 = vmatpush.msra.mxu2 %v298_v18 }
 0x11f   : > { %522 = vmatmul.msk.f32.vlgmr.msra.gmra.mxu0 %vm313_vm7, %v299_v17  ;;  %523 = vmatmul.msk.f32.vlgmr.msra.gmra.mxu2 %vm313_vm7, %v300_v28 }
 0x19c   : > { %v339_v20 = vpop.f32.mrf.mxu0 }
 0x19d   : > { %v340_v21 = vadd.f32 %v339_v20, %v306_v19 }
 0x19f   : > { %v345_v22 = vmax.f32 %v340_v21, 0.0 }
 0x1a1   : > { %348 = vrot.lane.b32.xlu2 %v345_v22, %s772_s26 }
 0x1a2   : > { %v342_v39 = vpop.f32.mrf.mxu2 }
 0x1a9   : > { %369 = vperm.xlu2 %626, %v366_v23  }
 0x1fb   : > { %v349_v25 = vpop.permute.xlu2 %348 }
 0x1fc   : > { %v351_v26 = vsel %vm279_vm2, %v346_v24, %v349_v25  ;;  %401 = vst.msk [vmem:[#allocation3] sm:$0xff] %vm279_vm2, %v349_v25 }
 0x1fd   : > { %v632_v27 = vpack.i.bf16 %v349_v25, %v351_v26 }
 0x1ff   : > { %633 = vrot.lane.b32.xlu1 %v632_v27, %s774_s11  ;;  %628 = vrot.lane.b32.xlu0 %v632_v27, %s773_s10  ;;  %s526_s11 = sshll.u32 %s754_s22, 1 }
 0x200   : > { %s413_s13 = sadd.s32 %s750_s21, %s526_s11  ;;  %s403_s21 = scalar_lea.sflag [#allocation6], %s254_s30 }
 0x201   : > { %s527_s14 = sshll.u32 %s413_s13, 3 }
 0x202   : > { %s415_s17 = scalar_lea.hbm %s994_s5, %s527_s14  ;;  %s688_s14 = scalar_lea.hbm %s994_s5, 32 }
 0x203   : > { %v370_v41 = vpop.permute.xlu2 %369  ;;  %s419_s26 = sshll.u32 %s415_s17, 4  ;;  %s420_s26 = int_to_ptr.hbm [resolvable:$true] %s419_s26 }
 0x204   : > { %s682_s22 = sshra.s32 %s420_s26, 4  ;;  %s683_s22 = int_to_ptr.hbm [resolvable:$true] %s682_s22 }
 0x205   : > { %s684_s10 = scalar_lea.hbm %s683_s22, 8  ;;  %p689_p9 = scmp.lt.s32.totalorder %s683_s22, %s994_s5 }
 0x206   : > { %p685_p5 = scmp.ne.s32.totalorder %s683_s22, %s684_s10  ;;  %p690_p10 = scmp.lt.s32.totalorder %s688_s14, %s684_s10 }
 0x207   : > { %310 = vperm.xlu0 %637, %v302_v29  }
 0x208   : > { %p686_p6 = pnand %p685_p5, %p858_p3  ;;  %p691_p11 = por %p690_p10, %p689_p9 }
 0x20a   : > { %p687_p7 = pneg %p686_p6 }
 0x20c   : > { %p692_p12 = pnand %p691_p11, %p687_p7 }
 0x271   : > { %v634_v30 = vpop.permute.xlu1 %633  ;;  %v629_v31 = vpop.permute.xlu0 %628 }
 0x272   : > { %v636_v32 = vunpack.i.h.bf16 %v634_v30  ;;  %v635_v33 = vunpack.i.l.bf16 %v634_v30  ;;  %v631_v34 = vunpack.i.h.bf16 %v629_v31  ;;  %v630_v35 = vunpack.i.l.bf16 %v629_v31 }
 0x274   : > { %v363_v36 = vsel %vm295_vm4, %v630_v35, %v631_v34  ;;  %v357_v37 = vsel %vm288_vm6, %v635_v33, %v636_v32 }
 0x275   : > { %389 = vmatpush.msra.mxu1 %v363_v36 }
 0x277   : > { %390 = vmatpush.msra.mxu1 %v357_v37 }
 0x279   : > { %391 = vmatpush.msra.mxu1 %v351_v26  ;;  %v311_v40 = vpop.permute.xlu0 %310 }
 0x27a   : > { %524 = vmatmul.msk.f32.vlgmr.msra.gmra.mxu1 %vm372_vm8, %v365_v38  ;;  %v343_v44 = vadd.f32 %v342_v39, %v311_v40 }
 0x2f7   : > { %v393_v42 = vpop.f32.mrf.mxu1 }
 0x2f8   : > { %v394_v43 = vadd.f32 %v393_v42, %v370_v41 }
 0x2fa   : > { %v396_v45 = vmax.f32 %v394_v43, 0.0 }
 0x2fc   : > { %v397_v46 = vadd.f32 %v396_v45, %v343_v44 }
 0x2fe   : > { %398 = vst [vmem:[%s256_s6] sm:$0xff] %v397_v46 }
 0x2ff   : > { %695 = shalt.err (!%p692_p12)
}
 0x300   : > { %536 = dma.vmem_to_hbm [thread:$0]  (%p858_p3), %s418_s27, 128, %s420_s26, %s403_s21  }
 0x301 PF: > { %p548_p13 = scmp.ge.s32.totalorder %s766_s25, 2  ;;  %s431_s30 = sand.u32 1, %s738_s18  }
 0x302   : > { %s432_s9 = scalar_lea.sflag [#allocation6], %s431_s30 }
 0x303   : > { %p543_p0 = pnand %p548_p13, %p867_p8 }
 0x305   : > { %p544_p1 = pneg %p543_p0 }
 0x307   : > { %733 = dma.done.wait (%p544_p1), %s432_s9, 128  }
 0x308   : > { %735 = vsyncadd (%p544_p1), %s432_s9, 4294967168  ;;  %s19_s25 = sadd.s32 1, %s766_s25   ;;  %s999_s18 = smov %s742_s19 }
 0x309   : > { %p16_p2 = scmp.ge.s32.totalorder %s19_s25, 6   ;;  %s1000_s19 = smov %s746_s20 }
 0x30a   : > { %s1001_s20 = smov %s888_s16  ;;  %s1002_s21 = smov %s758_s23 }
 0x30b   : > { %s1003_s22 = smov %s762_s24  ;;  %s1004_s23 = smov %s1007_s28 }
 0x30c   : > { %s1005_s24 = smov %s1011_s29  ;;  %18 = sbr.rel (!%p16_p2) target bundleno = 6 (0x6), region = 84 }
 0x311   :  { %438 = vsyncpa [#allocation5], 1 }
 0x312   :  { %440 = vsyncpa [#allocation5 + $0x1], 1 }
 0x313   :  { %441 = vsyncpa [#allocation6], 1 }
 0x314   :  { %443 = vsyncpa [#allocation6 + $0x1], 1 }

</bundles_post_ra>
